<compile_context>
chip_gen: v7x
topology: tpu7x:2x2x1
jax: 0.10.0
libtpu: 0.0.40
codegen_flags: <defaults>
</compile_context>

<pallas_src>
import math

import jax
import jax.numpy as jnp
from jax.experimental import pallas as pl
from jax.experimental.pallas import tpu as pltpu


def diag_metric_kernel(x_ref, wb_ref, o_ref):
    # wb_ref is (2, D): row 0 = weight, row 1 = bias (already in out dtype).
    # (1, D) rows broadcast over the (tb, D) batch tile on the VPU.
    w = wb_ref[0:1, :]
    b = wb_ref[1:2, :]
    xv = x_ref[...].astype(o_ref.dtype)   # in-kernel upcast of the streamed tile
    o_ref[...] = w * xv + b


def _vmem_budget():
    """(tile_budget_bytes, vmem_limit_bytes) derived from the part's VMEM size."""
    cap = 128 << 20
    try:
        cap = int(pltpu.get_tpu_info().vmem_capacity_bytes)
    except Exception:
        pass
    if cap <= (64 << 20):          # v7x-class: 64 MiB per TensorCore
        return 20 << 20, 32 << 20  # leave ~headroom below the 32 MiB scoped limit
    return 48 << 20, 64 << 20      # v5e / v6e: 128 MiB physical


def _num_tensorcores():
    """Best-effort TensorCore-per-device count; defaults to 1 (v5e/v6e)."""
    try:
        info = pltpu.get_tpu_info()
        for attr in ("num_cores", "tensorcore_count", "core_count"):
            v = getattr(info, attr, None)
            if v:
                return max(1, int(v))
    except Exception:
        pass
    try:
        return max(1, int(getattr(jax.devices()[0], "num_cores", 1)))
    except Exception:
        return 1


def _pick_tb(B, D, itemsize_in, itemsize_out, sub, tile_budget, num_cores):
    """Largest batch-tile fitting the double-buffered VMEM budget."""
    bytes_per_row = 2 * D * (itemsize_in + itemsize_out)   # 2x in + 2x out buffers
    tb = max(sub, tile_budget // bytes_per_row)
    tb = min(tb, 2048)                                     # past the roofline knee
    b_pad = ((B + sub - 1) // sub) * sub
    tb = min(tb, b_pad)
    # Multi-TC parts only: keep >=2 grid steps per core (DMA/compute overlap on
    # each core). Single-TC v5e/v6e: never shrink the tile for this.
    if num_cores > 1:
        min_steps = 2 * num_cores
        if b_pad >= min_steps * sub:
            target = (b_pad + min_steps - 1) // min_steps
            target = max(sub, (target // sub) * sub)       # round DOWN to keep steps
            tb = min(tb, target)
    tb = max(sub, (tb // sub) * sub)
    return tb


def _fold_for_lanes(B, D):
    """For non-128-multiple D, fold rows to a lane-dense (rows, L) view.

    Returns (rows, L, reps) such that x.reshape(rows, L) and weight/bias tiled
    `reps` times along lanes compute the same elementwise affine, or None if
    no fold is needed/possible.
    """
    if D % 128 == 0:
        return None
    L = (128 * D) // math.gcd(128, D)      # lcm(128, D): lane-dense & period-aligned
    if (B * D) % L != 0:
        return None                         # fall back to full-D (masked) blocks
    while L < 1024 and (B * D) % (2 * L) == 0:
        L *= 2
    return (B * D) // L, L, L // D


def diagonal_metric(x, weight, bias, *, tb=None, force_pallas=False,
                    donate_x=False, small_input_bytes=2 << 20):
    """y = weight * x + bias, streamed over batch with lane-dense tiles."""
    assert x.ndim == 2
    B, D = x.shape
    assert weight.shape == (1, D)
    assert bias.shape == (D,)

    out_dtype = jnp.result_type(x.dtype, weight.dtype, bias.dtype)
    in_itemsize = jnp.dtype(x.dtype).itemsize
    out_itemsize = jnp.dtype(out_dtype).itemsize

    # Tiny-input fallback: let XLA fuse the trivial affine (a pallas_call here
    # is pure launch/step overhead and blocks producer/consumer fusion).
    total_bytes = x.size * (in_itemsize + out_itemsize)
    if not force_pallas and total_bytes < small_input_bytes:
        return (weight * x + bias).astype(out_dtype)

    wb = jnp.concatenate(
        [weight.astype(out_dtype), bias.reshape(1, D).astype(out_dtype)], axis=0
    )  # (2, D): resident parameter block

    fold = _fold_for_lanes(B, D)
    if fold is not None:
        rows, L, reps = fold
        x_run = x.reshape(rows, L)          # contiguous reshape: layout plumbing only
        wb_run = jnp.tile(wb, (1, reps))
        Br, Dr = rows, L
    else:
        x_run, wb_run, Br, Dr = x, wb, B, D

    tile_budget, vmem_limit = _vmem_budget()
    num_cores = _num_tensorcores()
    # Sublane-pack multiple for the narrowest dtype in play (8 f32, 16 bf16, 32 i8).
    sub = max(8, 32 // min(in_itemsize, out_itemsize))

    if tb is None:
        tb = _pick_tb(Br, Dr, in_itemsize, out_itemsize, sub, tile_budget, num_cores)

    grid = (pl.cdiv(Br, tb),)

    io_aliases = {}
    if donate_x and x.dtype == out_dtype:
        io_aliases = {0: 0}                 # footprint win only (y written over x)

    y = pl.pallas_call(
        diag_metric_kernel,
        out_shape=jax.ShapeDtypeStruct((Br, Dr), out_dtype),
        grid_spec=pltpu.PrefetchScalarGridSpec(
            num_scalar_prefetch=0,
            grid=grid,
            in_specs=[
                pl.BlockSpec((tb, Dr), lambda i: (i, 0)),   # x tile, native dtype
                pl.BlockSpec((2, Dr), lambda i: (0, 0)),    # weight+bias, DMA'd once
            ],
            out_specs=pl.BlockSpec((tb, Dr), lambda i: (i, 0)),
        ),
        compiler_params=pltpu.CompilerParams(
            dimension_semantics=("parallel",),
            vmem_limit_bytes=vmem_limit,
        ),
        input_output_aliases=io_aliases,
    )(x_run, wb_run)

    return y.reshape(B, D) if fold is not None else y


if __name__ == "__main__":
    key = jax.random.PRNGKey(0)
    k1, k2, k3 = jax.random.split(key, 3)

    def kaiming_weight(k, D):
        # nn.init.kaiming_normal_ on (1, D): fan_in=D, gain=sqrt(2) -> std=sqrt(2/D)
        return jnp.sqrt(2.0 / D) * jax.random.normal(k, (1, D), dtype=jnp.float32)

    ok = True

    # 1) f32 x, D multiple of 128 — main lane-dense streaming path.
    B, D = 16, 256
    x = jax.random.normal(k1, (B, D), dtype=jnp.float32)
    w = kaiming_weight(k2, D)
    b = jnp.zeros((D,), dtype=jnp.float32)
    y = diagonal_metric(x, w, b, force_pallas=True)
    jax.block_until_ready(y)
    ok &= bool(jnp.allclose(y, w * x + b, atol=1e-6, rtol=1e-6))

    # 2) bf16 x, f32 params — exercises the in-kernel upcast (no wrapper astype).
    x16 = x.astype(jnp.bfloat16)
    y2 = diagonal_metric(x16, w, b, force_pallas=True)
    jax.block_until_ready(y2)
    ok &= (y2.dtype == jnp.float32)
    ok &= bool(jnp.allclose(y2, w * x16.astype(jnp.float32) + b, atol=1e-3, rtol=1e-3))

    # 3) narrow D (not a multiple of 128) — lane-dense fold path.
    Dn = 64
    xn = jax.random.normal(k3, (B, Dn), dtype=jnp.float32)
    wn = kaiming_weight(k2, Dn)
    bn = jnp.zeros((Dn,), dtype=jnp.float32)
    y3 = diagonal_metric(xn, wn, bn, force_pallas=True)
    jax.block_until_ready(y3)
    ok &= bool(jnp.allclose(y3, wn * xn + bn, atol=1e-6, rtol=1e-6))

    # 4) tiny-input fallback (plain XLA path; no pallas_call).
    y4 = diagonal_metric(x, w, b)
    jax.block_until_ready(y4)
    ok &= bool(jnp.allclose(y4, w * x + b, atol=1e-6, rtol=1e-6))

    assert y.shape == (B, D) and y2.shape == (B, D) and y3.shape == (B, Dn)
    assert ok
    print("KERNEL_OK")
</pallas_src>

<mosaic_0001>
module attributes {stable_mosaic.version = 11 : i64} {
  func.func @diag_metric_kernel(%arg0: i32, %arg1: memref<16x256xf32, #tpu.memory_space<vmem>>, %arg2: memref<2x256xf32, #tpu.memory_space<vmem>>, %arg3: memref<16x256xf32, #tpu.memory_space<vmem>>) attributes {dimension_semantics = [#tpu.dimension_semantics<parallel>], iteration_bounds = array<i64: 1>, scalar_prefetch = 0 : i64, scratch_operands = 0 : i64, tpu.core_type = #tpu.core_type<tc>, window_params = [{transform_indices = @transform_0, window_bounds = array<i64: 16, 256>}, {pipeline_mode = #tpu.pipeline_mode<synchronous>, transform_indices = @transform_1, window_bounds = array<i64: 2, 256>}, {transform_indices = @transform_2, window_bounds = array<i64: 16, 256>}]} {
    %c0 = arith.constant 0 : index
    %c0_0 = arith.constant 0 : index
    %0 = vector.load %arg2[%c0, %c0_0] : memref<2x256xf32, #tpu.memory_space<vmem>>, vector<1x256xf32>
    %c1 = arith.constant 1 : index
    %c0_1 = arith.constant 0 : index
    %1 = vector.load %arg2[%c1, %c0_1] : memref<2x256xf32, #tpu.memory_space<vmem>>, vector<1x256xf32>
    %c0_2 = arith.constant 0 : index
    %c0_3 = arith.constant 0 : index
    %2 = vector.load %arg1[%c0_2, %c0_3] : memref<16x256xf32, #tpu.memory_space<vmem>>, vector<16x256xf32>
    %3 = vector.broadcast %0 : vector<1x256xf32> to vector<16x256xf32>
    %4 = arith.mulf %3, %2 : vector<16x256xf32>
    %5 = vector.broadcast %1 : vector<1x256xf32> to vector<16x256xf32>
    %6 = arith.addf %4, %5 : vector<16x256xf32>
    %c0_4 = arith.constant 0 : index
    %c0_5 = arith.constant 0 : index
    %7 = vector.load %arg3[%c0_4, %c0_5] : memref<16x256xf32, #tpu.memory_space<vmem>>, vector<16x256xf32>
    tpu.vector_store %arg3[%c0_4, %c0_5], %6 {strides = array<i32>} : memref<16x256xf32, #tpu.memory_space<vmem>>, vector<16x256xf32>,
    return
  }
  func.func @transform_0(%arg0: i32) -> (i32, i32) {
    %c0_i32 = arith.constant 0 : i32
    %c0_i32_0 = arith.constant 0 : i32
    return %arg0, %c0_i32 : i32, i32
  }
  func.func @transform_1(%arg0: i32) -> (i32, i32) {
    %c0_i32 = arith.constant 0 : i32
    %c0_i32_0 = arith.constant 0 : i32
    %c0_i32_1 = arith.constant 0 : i32
    return %c0_i32, %c0_i32_0 : i32, i32
  }
  func.func @transform_2(%arg0: i32) -> (i32, i32) {
    %c0_i32 = arith.constant 0 : i32
    %c0_i32_0 = arith.constant 0 : i32
    return %arg0, %c0_i32 : i32, i32
  }
}

</mosaic_0001>

<bundles_post_ra>
// kernel: tpu_custom_call.1
= control target key start
LH: loop header
LB: loop body
LE: loop exit
PB: predicated region body
PF: predicated region fallthrough
CT: control target
= control target key end

     0   :  { %7 = vsyncpa [#allocation3], 0  ;;  %s236_s0 = inlined_call_operand.hbm [shape: f32[16,256], index: 0, kind: input, shape index: {}]   ;;  %s237_s1 = inlined_call_operand.hbm [shape: f32[2,256], index: 1, kind: input, shape index: {}]   ;;  %s238_s2 = inlined_call_operand.hbm [shape: f32[16,256], index: 2, kind: output, shape index: {}]  }
   0x1   :  { %8 = vsyncpa [#allocation6], 0 }
   0x2   :  { %9 = vsyncpa [#allocation4], 0  ;;  %s174_s9 = smov [#allocation2]   ;;  %s102_s13 = scalar_lea.hbm %s236_s0, 512 }
   0x3   :  { %s15_s10 = sshll.u32 %s174_s9, 4  ;;  %p103_p0 = scmp.ne.s32.totalorder %s236_s0, %s102_s13  ;;  %s16_s10 = int_to_ptr.vmem [resolvable:$true] %s15_s10 }
   0x4   :  { %p106_p1 = scmp.lt.u32.totalorder %s102_s13, %s236_s0 }
   0x6   :  { %p108_p2 = pnand %p106_p1, %p103_p0 }
   0x8   :  { %111 = shalt.err (!%p108_p2)
}
   0x9   :  { %s112_s18 = scalar_lea.vmem %s16_s10, 512  ;;  %p117_p4 = scmp.lt.s32.totalorder %s16_s10, %s16_s10 }
   0xa   :  { %p113_p3 = scmp.ne.s32.totalorder %s16_s10, %s112_s18  ;;  %p118_p5 = scmp.lt.s32.totalorder %s112_s18, %s112_s18 }
   0xc   :  { %p119_p6 = por %p118_p5, %p117_p4 }
   0xe   :  { %p120_p7 = pnand %p119_p6, %p113_p3 }
  0x10   :  { %123 = shalt.err (!%p120_p7)
}
  0x11   :  { %s175_s19 = smov 256   ;;  %s176_s20 = smov 16  }
  0x12   :  { %21 = dma.hbm_to_vmem [thread:$0]  %s236_s0, 512, %s16_s10, [#allocation3], %s175_s19, %s175_s19, %s176_s20  }
  0x13   :  { %s177_s23 = smov [#allocation5]   ;;  %s124_s27 = scalar_lea.hbm %s237_s1, 64 }
  0x14   :  { %s28_s24 = sshll.u32 %s177_s23, 4  ;;  %p125_p8 = scmp.ne.s32.totalorder %s237_s1, %s124_s27  ;;  %s29_s24 = int_to_ptr.vmem [resolvable:$true] %s28_s24 }
  0x15   :  { %p128_p9 = scmp.lt.u32.totalorder %s124_s27, %s237_s1 }
  0x17   :  { %p130_p10 = pnand %p128_p9, %p125_p8 }
  0x19   :  { %133 = shalt.err (!%p130_p10)
}
  0x1a   :  { %s134_s4 = scalar_lea.vmem %s29_s24, 64  ;;  %p139_p12 = scmp.lt.s32.totalorder %s29_s24, %s29_s24 }
  0x1b   :  { %p135_p11 = scmp.ne.s32.totalorder %s29_s24, %s134_s4  ;;  %p140_p13 = scmp.lt.s32.totalorder %s134_s4, %s134_s4 }
  0x1d   :  { %p141_p0 = por %p140_p13, %p139_p12 }
  0x1f   :  { %p142_p1 = pnand %p141_p0, %p135_p11 }
  0x21   :  { %145 = shalt.err (!%p142_p1)
}
  0x22   :  { %31 = dma.hbm_to_vmem [thread:$0]  %s237_s1, 64, %s29_s24, [#allocation6]  }
  0x23   :  { %168 = dma.done.wait [#allocation3], 512  }
  0x24   :  { %169 = vsyncadd [#allocation3], 4294966784 }
  0x25   :  { %170 = dma.done.wait [#allocation6], 64  }
  0x26   :  { %171 = vsyncadd [#allocation6], 4294967232  ;;  %v46_v0 = vlaneseq  ;;  %v38_v4 = vld [vmem:[#allocation5] ss:$2 sm:$0x3]  ;;  %v42_v9 = vld [vmem:[#allocation2 + $0x8] sm:$0xff] }
  0x27   :  { %v40_v5 = vld [vmem:[#allocation5 + $0x1] ss:$2 sm:$0x3]  ;;  %v43_v12 = vld [vmem:[#allocation2 + $0x10] sm:$0xff]  ;;  %v44_v13 = vld [vmem:[#allocation2 + $0x18] sm:$0xff]  ;;  %s178_s6 = smov [#allocation7]  }
  0x28   :  { %v47_v1 = vshrl.u32 %v46_v0, 7  ;;  %v41_v6 = vld [vmem:[#allocation2] sm:$0xff]  ;;  %s84_s1 = sshll.u32 %s178_s6, 4  ;;  %s85_s1 = int_to_ptr.vmem [resolvable:$true] %s84_s1 }
  0x29   :  { %s146_s7 = scalar_lea.vmem %s85_s1, 512  ;;  %p151_p3 = scmp.lt.s32.totalorder %s85_s1, %s85_s1 }
  0x2a   :  { %v48_v2 = vsub.s32 0, %v47_v1  ;;  %v52_v3 = vsub.s32 1, %v47_v1  ;;  %p147_p2 = scmp.ne.s32.totalorder %s85_s1, %s146_s7  ;;  %p152_p4 = scmp.lt.s32.totalorder %s146_s7, %s146_s7 }
  0x2c   :  { %v49_v7 = vrot.slane %v38_v4, %v48_v2  ;;  %v64_v8 = vrot.slane %v40_v5, %v48_v2  ;;  %v53_v10 = vrot.slane %v38_v4, %v52_v3  ;;  %v68_v11 = vrot.slane %v40_v5, %v52_v3  ;;  %p153_p5 = por %p152_p4, %p151_p3 }
  0x2e   :  { %v56_v14 = vmul.f32 %v49_v7, %v41_v6  ;;  %v57_v15 = vmul.f32 %v53_v10, %v42_v9  ;;  %v58_v16 = vmul.f32 %v49_v7, %v43_v12  ;;  %v59_v17 = vmul.f32 %v53_v10, %v44_v13  ;;  %p154_p6 = pnand %p153_p5, %p147_p2 }
  0x30   :  { %v71_v18 = vadd.f32 %v64_v8, %v56_v14  ;;  %v72_v19 = vadd.f32 %v68_v11, %v57_v15  ;;  %v73_v20 = vadd.f32 %v64_v8, %v58_v16  ;;  %v74_v21 = vadd.f32 %v68_v11, %v59_v17 }
  0x32   :  { %75 = vst [vmem:[#allocation7] sm:$0xff] %v71_v18  ;;  %76 = vst [vmem:[#allocation7 + $0x8] sm:$0xff] %v72_v19 }
  0x33   :  { %77 = vst [vmem:[#allocation7 + $0x10] sm:$0xff] %v73_v20  ;;  %78 = vst [vmem:[#allocation7 + $0x18] sm:$0xff] %v74_v21 }
  0x34   :  { %157 = shalt.err (!%p154_p6)
}
  0x35   :  { %s158_s10 = scalar_lea.hbm %s238_s2, 512 }
  0x36   :  { %p159_p7 = scmp.ne.s32.totalorder %s238_s2, %s158_s10  ;;  %p162_p8 = scmp.lt.u32.totalorder %s158_s10, %s238_s2 }
  0x38   :  { %p164_p9 = pnand %p162_p8, %p159_p7 }
  0x3a   :  { %167 = shalt.err (!%p164_p9)
}
  0x3b   :  { %90 = dma.vmem_to_hbm [thread:$0]  %s85_s1, 512, %s238_s2, [#allocation4], %s175_s19, %s175_s19, %s176_s20  }
  0x3c   :  { %172 = dma.done.wait [#allocation4], 512  }
  0x3d   :  { %173 = vsyncadd [#allocation4], 4294966784 }
  0x3e   :  { %94 = vsyncpa [#allocation3], 1 }
  0x3f   :  { %95 = vsyncpa [#allocation6], 1 }
  0x40   :  { %96 = vsyncpa [#allocation4], 1 }

</bundles_post_ra>
